<compile_context>
chip_gen: v6e
topology: v6e:2x2x1
jax: 0.10.0
libtpu: 0.0.40
codegen_flags: <defaults>
</compile_context>

<pallas_src>
import functools

import jax
import jax.numpy as jnp
from jax.experimental import pallas as pl
from jax.experimental.pallas import tpu as pltpu


def _disc_ah_kernel(x_ref, p_ref, o_ref, *, d):
    """Single invocation, everything VMEM resident.

    x_ref : (B, D)      input rows (already concatenated, batch on sublanes)
    p_ref : (H, D + 3)  packed params: [:, :D] = (w0 @ w1)^T
                                       [:, D]  = (b0 @ w1 + b1)^T
                                       [:, D+1]= w2 (output weights, column)
                                       [0, D+2]= b2 (output bias, scalar)
    o_ref : (1, B)      lane-dense output row (softplus applied)
    """
    x = x_ref[...].astype(jnp.float32)        # (B, D)
    w01t = p_ref[:, :d]                       # (H, D)
    b01 = p_ref[:, d:d + 1]                   # (H, 1)
    w2 = p_ref[:, d + 1:d + 2]                # (H, 1)
    b2 = p_ref[0:1, d + 2:d + 3]              # (1, 1)

    # Fused Linear0+Linear1, computed transposed so batch lands on the lane axis:
    #   hT[j, b] = relu( sum_k w01t[j, k] * x[b, k] + b01[j] )
    hT = jax.lax.dot_general(
        w01t, x, (((1,), (1,)), ((), ())),
        preferred_element_type=jnp.float32)   # (H, B)  MXU, A @ B^T form
    hT = jnp.maximum(hT + b01, 0.0)           # ReLU

    # Output Linear(n_hidden -> 1) as VPU multiply + sublane reduce instead of an
    # N=1 MXU matmul; result stays lane-dense: (1, B).
    z = jnp.sum(hT * w2, axis=0, keepdims=True) + b2

    # Numerically stable softplus (matches F.softplus within its linearization).
    sp = jnp.maximum(z, 0.0) + jnp.log1p(jnp.exp(-jnp.abs(z)))
    o_ref[...] = sp.astype(o_ref.dtype)


@jax.jit
def discriminator_ah_forward(inputs, packed_params):
    """softplus(squeeze(MLP(cat(inputs, dim=1)))) via one grid-less Pallas call."""
    # torch.cat(x, dim=1): pure data plumbing, done in the wrapper.
    x = jnp.concatenate(inputs, axis=1).astype(jnp.float32)
    b = x.shape[0]
    d = packed_params.shape[1] - 3

    out = pl.pallas_call(
        functools.partial(_disc_ah_kernel, d=d),
        out_shape=jax.ShapeDtypeStruct((1, b), jnp.float32),
        in_specs=[
            pl.BlockSpec(memory_space=pltpu.MemorySpace.VMEM),
            pl.BlockSpec(memory_space=pltpu.MemorySpace.VMEM),
        ],
        out_specs=pl.BlockSpec(memory_space=pltpu.MemorySpace.VMEM),
    )(x, packed_params)
    # torch.squeeze: drop all size-1 dims (batch sits on the lane axis in-kernel).
    return jnp.squeeze(out)


def init_params(key, input_dim, n_hidden):
    """PyTorch-Linear-like uniform init; weights stored as (in_features, out_features)."""
    ks = jax.random.split(key, 6)

    def lin(kw, kb, fan_in, fan_out):
        bound = 1.0 / jnp.sqrt(fan_in)
        w = jax.random.uniform(kw, (fan_in, fan_out), jnp.float32, -bound, bound)
        b = jax.random.uniform(kb, (1, fan_out), jnp.float32, -bound, bound)
        return w, b

    w0, b0 = lin(ks[0], ks[1], input_dim, n_hidden)
    w1, b1 = lin(ks[2], ks[3], n_hidden, n_hidden)
    w2, b2 = lin(ks[4], ks[5], n_hidden, 1)
    return (w0, b0, w1, b1, w2, b2)


def pack_params(params):
    """Pre-fuse Linear0/Linear1 (exact: no activation between them) and pack all
    parameters into one (H, D+3) f32 buffer so the kernel needs a single DMA."""
    w0, b0, w1, b1, w2, b2 = params
    d, h = w0.shape
    w01 = w0 @ w1                     # (D, H)
    b01 = b0 @ w1 + b1                # (1, H)
    packed = jnp.zeros((h, d + 3), jnp.float32)
    packed = packed.at[:, :d].set(w01.T)
    packed = packed.at[:, d].set(b01[0])
    packed = packed.at[:, d + 1].set(w2[:, 0])
    packed = packed.at[0, d + 2].set(b2[0, 0])
    return packed


def _reference(inputs, params):
    """Pure-JAX reference (unfused) for correctness check."""
    w0, b0, w1, b1, w2, b2 = params
    x = jnp.concatenate(inputs, axis=1)
    h = x @ w0 + b0
    h = jnp.maximum(h @ w1 + b1, 0.0)
    z = h @ w2 + b2
    return jax.nn.softplus(jnp.squeeze(z))


if __name__ == "__main__":
    key = jax.random.PRNGKey(0)
    k_a, k_h, k_p = jax.random.split(key, 3)

    batch = 8
    dim_a, dim_h = 16, 16                 # two tensors concatenated along dim=1
    input_dim = dim_a + dim_h             # 32
    n_hidden = 32                         # Discriminator_AH(input_dim=32, n_layers=2, n_hidden=32)

    x_a = jax.random.normal(k_a, (batch, dim_a), dtype=jnp.float32)
    x_h = jax.random.normal(k_h, (batch, dim_h), dtype=jnp.float32)

    params = init_params(k_p, input_dim, n_hidden)
    packed = pack_params(params)

    out = discriminator_ah_forward((x_a, x_h), packed)
    out = jax.block_until_ready(out)

    ref = _reference((x_a, x_h), params)
    assert out.shape == (batch,), out.shape
    assert jnp.allclose(out, ref, atol=1e-5, rtol=1e-5), (out, ref)

    print("KERNEL_OK")
</pallas_src>

<mosaic_0001>
module attributes {stable_mosaic.version = 11 : i64} {
  func.func @_disc_ah_kernel(%arg0: memref<8x32xf32, #tpu.memory_space<vmem>>, %arg1: memref<32x35xf32, #tpu.memory_space<vmem>>, %arg2: memref<1x8xf32, #tpu.memory_space<vmem>>) attributes {dimension_semantics = [], scalar_prefetch = 0 : i64, scratch_operands = 0 : i64, tpu.core_type = #tpu.core_type<tc>} {
    %c0 = arith.constant 0 : index
    %c0_0 = arith.constant 0 : index
    %0 = vector.load %arg0[%c0, %c0_0] : memref<8x32xf32, #tpu.memory_space<vmem>>, vector<8x32xf32>
    %c0_1 = arith.constant 0 : index
    %c0_2 = arith.constant 0 : index
    %1 = vector.load %arg1[%c0_1, %c0_2] : memref<32x35xf32, #tpu.memory_space<vmem>>, vector<32x32xf32>
    %c0_3 = arith.constant 0 : index
    %c32 = arith.constant 32 : index
    %2 = vector.load %arg1[%c0_3, %c32] : memref<32x35xf32, #tpu.memory_space<vmem>>, vector<32x1xf32>
    %c0_4 = arith.constant 0 : index
    %c33 = arith.constant 33 : index
    %3 = vector.load %arg1[%c0_4, %c33] : memref<32x35xf32, #tpu.memory_space<vmem>>, vector<32x1xf32>
    %c0_5 = arith.constant 0 : index
    %c34 = arith.constant 34 : index
    %4 = vector.load %arg1[%c0_5, %c34] : memref<32x35xf32, #tpu.memory_space<vmem>>, vector<1x1xf32>
    %cst = arith.constant dense<0.000000e+00> : vector<32x8xf32>
    %5 = tpu.matmul %1, %0, %cst {dimension_numbers = #tpu.dot_dimension_numbers<[1], [1], [0], [0], [0, 0, 1, 0], [], []>} : vector<32x32xf32>, vector<8x32xf32>, vector<32x8xf32> -> vector<32x8xf32>
    %6 = vector.broadcast %2 : vector<32x1xf32> to vector<32x8xf32>
    %7 = arith.addf %5, %6 : vector<32x8xf32>
    %cst_6 = arith.constant 0.000000e+00 : f32
    %8 = vector.broadcast %cst_6 : f32 to vector<32x8xf32>
    %9 = arith.maximumf %7, %8 : vector<32x8xf32>
    %10 = vector.broadcast %3 : vector<32x1xf32> to vector<32x8xf32>
    %11 = arith.mulf %9, %10 : vector<32x8xf32>
    %cst_7 = arith.constant dense<0.000000e+00> : vector<8xf32>
    %12 = vector.multi_reduction <add>, %11, %cst_7 [0] : vector<32x8xf32> to vector<8xf32>
    %13 = vector.shape_cast %12 : vector<8xf32> to vector<1x8xf32>
    %14 = vector.broadcast %4 : vector<1x1xf32> to vector<1x8xf32>
    %15 = arith.addf %13, %14 : vector<1x8xf32>
    %cst_8 = arith.constant 0.000000e+00 : f32
    %16 = vector.broadcast %cst_8 : f32 to vector<1x8xf32>
    %17 = arith.maximumf %15, %16 : vector<1x8xf32>
    %18 = math.absf %15 : vector<1x8xf32>
    %cst_9 = arith.constant 0.000000e+00 : f32
    %19 = vector.broadcast %cst_9 : f32 to vector<1x8xf32>
    %20 = arith.subf %19, %18 : vector<1x8xf32>
    %21 = math.exp %20 : vector<1x8xf32>
    %22 = math.log1p %21 : vector<1x8xf32>
    %23 = arith.addf %17, %22 : vector<1x8xf32>
    %c0_10 = arith.constant 0 : index
    %c0_11 = arith.constant 0 : index
    %24 = vector.load %arg2[%c0_10, %c0_11] : memref<1x8xf32, #tpu.memory_space<vmem>>, vector<1x8xf32>
    tpu.vector_store %arg2[%c0_10, %c0_11], %23 {strides = array<i32>} : memref<1x8xf32, #tpu.memory_space<vmem>>, vector<1x8xf32>,
    return
  }
}

</mosaic_0001>

<bundles_post_ra>
// kernel: discriminator_ah_forward.1
= control target key start
LH: loop header
LB: loop body
LE: loop exit
PB: predicated region body
PF: predicated region fallthrough
CT: control target
= control target key end

     0   :  { %7 = vsyncpa [#allocation3], 0  ;;  %s337_s0 = inlined_call_operand.vmem [shape: f32[8,32], index: 0, kind: input, shape index: {}]   ;;  %s338_s1 = inlined_call_operand.hbm [shape: f32[32,35], index: 1, kind: input, shape index: {}]   ;;  %s339_s2 = inlined_call_operand.hbm [shape: f32[1,8], index: 2, kind: output, shape index: {}]  }
   0x1   :  { %8 = vsyncpa [#allocation4], 0  ;;  %s306_s9 = smov [#allocation2]  }
   0x2   :  { %s16_s10 = sshll.u32 %s306_s9, 4  ;;  %s17_s10 = int_to_ptr.vmem [resolvable:$true] %s16_s10 }
   0x3   :  { %s270_s11 = scalar_lea.vmem %s17_s10, 512  ;;  %p275_p1 = scmp.lt.s32.totalorder %s17_s10, %s17_s10 }
   0x4   :  { %p271_p0 = scmp.ne.s32.totalorder %s17_s10, %s270_s11  ;;  %p276_p2 = scmp.lt.s32.totalorder %s270_s11, %s270_s11 }
   0x6   :  { %p277_p3 = por %p276_p2, %p275_p1 }
   0x8   :  { %p278_p4 = pnand %p277_p3, %p271_p0 }
   0xa   :  { %281 = shalt.err (!%p278_p4)
}
   0xb   :  { %s307_s12 = smov 128   ;;  %s308_s13 = smov 8  }
   0xc   :  { %22 = dma.hbm_to_vmem [thread:$0]  %s338_s1, 512, %s17_s10, [#allocation3], %s307_s12, %s307_s12, %s308_s13  }
   0xd   :  { %302 = dma.done.wait [#allocation3], 512  }
   0xe   :  { %303 = vsyncadd [#allocation3], 4294966784  ;;  %v309_v0 = vmov 32   ;;  %vm52_vm0 = vcmask 261120   ;;  %v26_v1 = vld [vmem:[%s337_s0] sm:$0xff]  ;;  %v29_v3 = vld [vmem:[#allocation2 + $0x10] sm:$0xff] }
   0xf   :  { %253 = vset.pattern.permute.xlu1 %v309_v0  ;;  %252 = vset.pattern.permute.xlu0 %v309_v0  ;;  %v27_v2 = vld [vmem:[#allocation2] sm:$0xff]  ;;  %v28_v4 = vld [vmem:[#allocation2 + $0x8] sm:$0xff]  ;;  %v30_v5 = vld [vmem:[#allocation2 + $0x18] sm:$0xff]  ;;  %v310_v6 = vmov 33   ;;  %v311_v8 = vmov 34   ;;  %vm173_vm1 = vcmask 64512  }
  0x10   :  { %235 = vmatprep.subr.msk.mxu0 %vm52_vm0, %v26_v1  ;;  %243 = vmatprep.subr.msk.mxu1 %vm52_vm0, %v26_v1  ;;  %v31_v7 = vld [vmem:[#allocation2] sm:$0x1]  ;;  %s312_s0 = smov [#allocation5]   ;;  %vm208_vm3 = vcmask 57344  }
  0x11   :  { %236 = vmatpush3.xpose.msk.msra.mxu0 %vm52_vm0, %v26_v1  ;;  %244 = vmatpush3.xpose.msk.msra.mxu1 %vm52_vm0, %v26_v1  ;;  %s216_s1 = sshll.u32 %s312_s0, 4  ;;  %s217_s1 = int_to_ptr.vmem [resolvable:$true] %s216_s1 }
  0x12   :  { %237 = vmatprep.mubr.msk.f32.mxu0 %vm52_vm0, %v27_v2  ;;  %240 = vmatprep.mubr.msk.f32.mxu1 %vm52_vm0, %v29_v3  ;;  %s282_s18 = scalar_lea.vmem %s217_s1, 16  ;;  %s286_s19 = scalar_lea.vmem %s217_s1, 32 }
  0x13   :  { %44 = vperm.xlu1 %253, %v29_v3   ;;  %34 = vperm.xlu0 %252, %v27_v2   ;;  %p283_p5 = scmp.ne.s32.totalorder %s217_s1, %s282_s18  ;;  %p287_p6 = scmp.lt.s32.totalorder %s217_s1, %s217_s1 }
  0x14   :  { %238 = vmatmul.mubr.msk.f32.vlgmr.msra.gmra.mxu0 %vm52_vm0, %v28_v4  ;;  %241 = vmatmul.mubr.msk.f32.vlgmr.msra.gmra.mxu1 %vm52_vm0, %v30_v5  ;;  %p288_p7 = scmp.lt.s32.totalorder %s286_s19, %s282_s18 }
  0x16   :  { %p289_p8 = por %p288_p7, %p287_p6 }
  0x17   :  { %49 = vperm.xlu1 %253, %v30_v5   ;;  %39 = vperm.xlu0 %252, %v28_v4  }
  0x18   :  { %p290_p9 = pnand %p289_p8, %p283_p5 }
  0x1b   :  { %255 = vset.pattern.permute.xlu1 %v310_v6  ;;  %254 = vset.pattern.permute.xlu0 %v310_v6 }
  0x1c   :  { %158 = vperm.xlu1 %255, %v28_v4   ;;  %154 = vperm.xlu0 %254, %v27_v2  }
  0x20   :  { %162 = vperm.xlu1 %255, %v29_v3   ;;  %166 = vperm.xlu0 %254, %v30_v5  }
  0x24   :  { %256 = vset.pattern.permute.xlu1 %v311_v8  ;;  %257 = vset.pattern.permute.xlu0 %v311_v8 }
  0x25   :  { %189 = vperm.xlu1 %256, %v31_v7  }
  0x8e   :  { %v45_v9 = vpop.permute.xlu1 %44  ;;  %v35_v10 = vpop.permute.xlu0 %34 }
  0x92   :  { %v50_v11 = vpop.permute.xlu1 %49  ;;  %v40_v12 = vpop.permute.xlu0 %39 }
  0x97   :  { %v159_v13 = vpop.permute.xlu1 %158  ;;  %v155_v14 = vpop.permute.xlu0 %154 }
  0x9b   :  { %v163_v28 = vpop.permute.xlu1 %162  ;;  %v167_v29 = vpop.permute.xlu0 %166 }
  0xa0   :  { %v190_v45 = vpop.permute.xlu1 %189 }
  0xd4   :  { %v239_v15 = vpop.f32.mrf.mxu0  ;;  %v242_v16 = vpop.f32.mrf.mxu1 }
  0xd5   :  { %v136_v17 = vadd.f32 %v239_v15, %v40_v12  ;;  %v146_v18 = vadd.f32 %v242_v16, %v50_v11 }
  0xd6   :  { %v130_v19 = vpop.f32.mrf.mxu0  ;;  %v140_v20 = vpop.f32.mrf.mxu1 }
  0xd7   :  { %v150_v21 = vmax.f32 %v136_v17, 0.0  ;;  %v131_v22 = vadd.f32 %v130_v19, %v35_v10  ;;  %v141_v23 = vadd.f32 %v140_v20, %v45_v9  ;;  %v152_v25 = vmax.f32 %v146_v18, 0.0 }
  0xd9   :  { %v170_v24 = vmul.f32 %v159_v13, %v150_v21  ;;  %v149_v26 = vmax.f32 %v131_v22, 0.0  ;;  %v151_v27 = vmax.f32 %v141_v23, 0.0  ;;  %v172_v34 = vmul.f32 %v167_v29, %v152_v25 }
  0xdb   :  { %v169_v30 = vmul.f32 %v155_v14, %v149_v26  ;;  %v171_v31 = vmul.f32 %v163_v28, %v151_v27  ;;  %v175_v32 = vsel %vm173_vm1, %v170_v24, 0.0  ;;  %v179_v38 = vsel %vm173_vm1, %v172_v34, 0.0 }
  0xdd   :  { %v174_v33 = vsel %vm173_vm1, %v169_v30, 0.0  ;;  %v177_v36 = vsel %vm173_vm1, %v171_v31, 0.0 }
  0xde   :  { %v176_v35 = vadd.f32 %v175_v32, %v174_v33 }
  0xe0   :  { %v178_v37 = vadd.f32 %v177_v36, %v176_v35 }
  0xe2   :  { %v180_v39 = vadd.f32 %v179_v38, %v178_v37 }
  0xe4   :  { %v181_v40 = vrot.slane %v180_v39, 4 }
  0xe6   :  { %v182_v41 = vadd.f32 %v181_v40, %v180_v39 }
  0xe8   :  { %v183_v42 = vrot.slane %v182_v41, 2 }
  0xea   :  { %v184_v43 = vadd.f32 %v183_v42, %v182_v41 }
  0xec   :  { %v185_v44 = vrot.slane %v184_v43, 1 }
  0xee   :  { %v186_v46 = vadd.f32 %v185_v44, %v184_v43 }
  0xf0   :  { %v192_v47 = vadd.f32 %v190_v45, %v186_v46 }
  0xf2   :  { %v194_v48 = vand.u32 2147483647, %v192_v47  ;;  %v193_v59 = vmax.f32 %v192_v47, 0.0 }
  0xf4   :  { %v195_v49 = vsub.f32 0.0, %v194_v48 }
  0xf6   :  { %v196_v50 = vmul.f32 1.442695, %v195_v49 }
  0xf8   :  { %258 = vpow2.f32 %v196_v50 }
 0x105   :  { %v259_v51 = vpop.eup %258 }
 0x106   :  { %v198_v52 = vadd.f32 1.0, %v259_v51  ;;  %v201_v53 = vmul.f32 -0.5, %v259_v51  ;;  %v204_v55 = vand.u32 2147483647, %v259_v51 }
 0x108   :  { %260 = vlog2.f32 %v198_v52  ;;  %v202_v54 = vadd.f32 1.0, %v201_v53  ;;  %vm205_vm2 = vcmp.lt.f32.partialorder %v204_v55, 0.0004427343 }
 0x10a   :  { %v203_v58 = vmul.f32 %v259_v51, %v202_v54 }
 0x115   :  { %v261_v56 = vpop.eup %260 }
 0x116   :  { %v200_v57 = vmul.f32 0.6931472, %v261_v56 }
 0x118   :  { %v206_v60 = vsel %vm205_vm2, %v203_v58, %v200_v57 }
 0x119   :  { %v207_v61 = vadd.f32 %v206_v60, %v193_v59 }
 0x11b   :  { %209 = vst.msk [vmem:[#allocation5] sm:$0x1] %vm208_vm3, %v207_v61 }
 0x11c   :  { %293 = shalt.err (!%p290_p9)
}
 0x11d   :  { %219 = dma.vmem_to_hbm [thread:$0]  %s217_s1, 16, %s339_s2, [#allocation4]  }
 0x11e   :  { %304 = dma.done.wait [#allocation4], 16  }
 0x11f   :  { %305 = vsyncadd [#allocation4], 4294967280 }
 0x120   :  { %223 = vsyncpa [#allocation3], 1 }
 0x121   :  { %224 = vsyncpa [#allocation4], 1 }

</bundles_post_ra>
